<compile_context>
chip_gen: v7x
topology: tpu7x:2x2x1
jax: 0.10.0
libtpu: 0.0.40
codegen_flags: <defaults>
</compile_context>

<pallas_src>
import functools

import jax
import jax.numpy as jnp
import numpy as np
from jax.experimental import pallas as pl
from jax.experimental.pallas import tpu as pltpu


def _split_f32_to_bf16x3(a):
    """Exact 3-way bf16 split of an f32 array: hi + mid + lo == a (bitwise).

    Each residual has <= 8 significant bits, so it is exactly representable in
    bf16; multiplying the pieces by a 0/1 matrix with f32 accumulation and
    summing them reconstructs the original f32 value exactly.
    """
    hi = a.astype(jnp.bfloat16)
    r1 = a - hi.astype(jnp.float32)
    mid = r1.astype(jnp.bfloat16)
    lo = (r1 - mid.astype(jnp.float32)).astype(jnp.bfloat16)
    return hi, mid, lo


def _depth_to_space_kernel(p_ref, x_ref, o_ref, cstage_ref, stage_ref,
                           *, bs, co_blk, exact_split):
    # p_ref      : (w_blk*bs, w_blk*bs) bf16 0/1 interleave matrix (resident)
    # x_ref      : (bs*bs, co_blk, h_blk, w_blk)  source planes
    # o_ref      : (co_blk, h_blk*bs, w_blk*bs)   output tile
    # cstage_ref : (h_blk, w_blk*bs)  x-dtype     planes laid side by side
    # stage_ref  : (h_blk*bs, w_blk*bs) f32       per-channel assembly tile
    h_blk = x_ref.shape[2]
    w_blk = x_ref.shape[3]

    for co in range(co_blk):
        for b1 in range(bs):
            # Lay the bs source planes of this output row-phase side by side
            # along lanes:  cstage[hi, b2*w_blk + wi] = x[b1*bs + b2, co, hi, wi]
            # (contiguous static-slice stores only -- packed-dtype safe).
            for b2 in range(bs):
                cstage_ref[:, b2 * w_blk:(b2 + 1) * w_blk] = (
                    x_ref[b1 * bs + b2, co, :, :])
            row = cstage_ref[...]

            # W (lane) interleave on the MXU:  P[b2*w_blk + wi, wi*bs + b2] = 1.
            parts = _split_f32_to_bf16x3(row) if exact_split else (row,)
            acc = None
            for part in parts:
                contrib = jnp.dot(part, p_ref[...],
                                  preferred_element_type=jnp.float32)
                acc = contrib if acc is None else acc + contrib

            # H (sublane) interleave: stride-bs sublane store into the f32
            # staging tile (strided stores never see a sub-32-bit layout).
            stage_ref[pl.ds(b1, h_blk, stride=bs), :] = acc

        # One wide, contiguous, lane-dense store of the finished channel tile.
        o_ref[co, :, :] = stage_ref[...].astype(o_ref.dtype)


def _vmem_limit_bytes():
    # ~3/4 of physical VMEM, capped at 64 MiB:
    #   v5e/v6e (128 MiB physical) -> 64 MiB,  v7x (64 MiB physical) -> 48 MiB.
    cap = 64 * 1024 * 1024  # conservative default if the query fails
    try:
        info = pltpu.get_tpu_info()
        cap = int(getattr(info, "vmem_capacity_bytes", cap))
    except Exception:
        pass
    return min(64 * 1024 * 1024, (3 * cap) // 4)


def _footprint_bytes(h_blk, w_blk, co_blk, bs, itemsize):
    chan_tile = bs * bs * h_blk * w_blk                # elements / channel tile
    in_out = 4 * co_blk * chan_tile * itemsize         # 2x double-buffered in+out
    cstage = h_blk * w_blk * bs * itemsize             # side-by-side staging
    stage = chan_tile * 4                              # f32 assembly scratch
    perm = 2 * (w_blk * bs) ** 2 * 2                   # double-buffered bf16 P
    temps = 8 * h_blk * (w_blk * bs) * 4               # split pieces / accumulator
    return in_out + cstage + stage + perm + temps + (1 << 20)


def _choose_tiles(n, h, w, c_out, bs, itemsize, budget):
    """Pick (h_blk, w_blk, co_blk), or None if nothing reasonable fits VMEM."""
    # W tile: whole W, or a divisor that is a multiple of 128 (lane-dense
    # blocks); prefer w_blk*bs <= 512 so the permutation matmul stays a small
    # fraction of the HBM time.
    w_cands = [d for d in range(1, w + 1)
               if w % d == 0 and (d == w or d % 128 == 0)]
    preferred = [d for d in w_cands if d * bs <= 512]
    w_blk = max(preferred) if preferred else min(w_cands)

    # H tile: whole H, or a divisor that is a multiple of 8 (the (8,128) rule
    # applies to the input block's second-minor dim too).
    h_cands = sorted(
        (d for d in range(1, h + 1) if h % d == 0 and (d == h or d % 8 == 0)),
        reverse=True)
    h_blk = None
    for cand in h_cands:
        if _footprint_bytes(cand, w_blk, 1, bs, itemsize) <= budget:
            h_blk = cand
            break
    if h_blk is None:
        return None  # caller falls back to XLA; never emit an oversized block

    # Fold output channels so small per-channel tiles still amortize the
    # per-grid-step overhead (the cap bounds the fully-unrolled kernel body).
    co_cap = max(1, 32 // (bs * bs))
    co_blk = 1
    for cand in (d for d in range(1, c_out + 1) if c_out % d == 0):
        if cand <= co_cap and _footprint_bytes(
                h_blk, w_blk, cand, bs, itemsize) <= budget:
            co_blk = max(co_blk, cand)

    # v7x megacore: make sure there are >= 2 grid steps to shard across cores.
    if n * (c_out // co_blk) * (h // h_blk) * (w // w_blk) < 2:
        smaller = [d for d in h_cands if d < h_blk]
        if smaller:
            h_blk = max(smaller)
    return h_blk, w_blk, co_blk


def _interleave_matrix(w_blk, bs):
    # P[b2*w_blk + wi, wi*bs + b2] = 1   (0/1 is exactly representable in bf16).
    size = w_blk * bs
    p = np.zeros((size, size), dtype=np.float32)
    wi = np.arange(w_blk)
    for b2 in range(bs):
        p[b2 * w_blk + wi, wi * bs + b2] = 1.0
    return jnp.asarray(p, dtype=jnp.bfloat16)


def _depth_to_space_xla(x, bs):
    # Plain XLA reshape/transpose, mirroring the PyTorch view/permute/view.
    n, c, h, w = x.shape
    c_out = c // (bs * bs)
    y = x.reshape(n, bs, bs, c_out, h, w)
    y = jnp.transpose(y, (0, 3, 4, 1, 5, 2))
    return y.reshape(n, c_out, h * bs, w * bs)


def depth_to_space(x, block_size):
    bs = int(block_size)
    n, c, h, w = x.shape
    assert c % (bs * bs) == 0, "channels must be divisible by block_size**2"
    if bs == 1:
        return x
    c_out = c // (bs * bs)

    supported_dtype = x.dtype in (jnp.float32, jnp.bfloat16)
    # TODO(synk): int8/fp16 need a packed relayout path; route them (and
    # lane-sparse w*bs < 128 tiles, which lose to plain XLA) through XLA.
    if not supported_dtype or w * bs < 128:
        return _depth_to_space_xla(x, bs)

    vmem_limit = _vmem_limit_bytes()
    budget = (6 * vmem_limit) // 10
    tiles = _choose_tiles(n, h, w, c_out, bs, x.dtype.itemsize, budget)
    if tiles is None:
        return _depth_to_space_xla(x, bs)
    h_blk, w_blk, co_blk = tiles

    # Free row-major view: channel c == (b1*bs + b2) * c_out + co.
    x5 = x.reshape(n, bs * bs, c_out, h, w)
    perm = _interleave_matrix(w_blk, bs)

    exact_split = x.dtype == jnp.float32
    n_parts = 3 if exact_split else 1
    kernel = functools.partial(
        _depth_to_space_kernel, bs=bs, co_blk=co_blk, exact_split=exact_split)

    cost = pl.CostEstimate(
        flops=2 * w_blk * bs * n_parts * x.size,       # permutation matmuls
        transcendentals=0,
        bytes_accessed=2 * x.size * x.dtype.itemsize,  # pure HBM relayout
    )

    grid = (n, c_out // co_blk, h // h_blk, w // w_blk)

    return pl.pallas_call(
        kernel,
        out_shape=jax.ShapeDtypeStruct((n, c_out, h * bs, w * bs), x.dtype),
        grid_spec=pltpu.PrefetchScalarGridSpec(
            num_scalar_prefetch=0,
            grid=grid,
            in_specs=[
                # Constant interleave matrix: same block index every step, so
                # it is DMA'd once and kept resident in VMEM.
                pl.BlockSpec((w_blk * bs, w_blk * bs),
                             lambda i, j, k, l: (0, 0)),
                pl.BlockSpec((None, bs * bs, co_blk, h_blk, w_blk),
                             lambda i, j, k, l: (i, 0, j, k, l)),
            ],
            out_specs=pl.BlockSpec((None, co_blk, h_blk * bs, w_blk * bs),
                                   lambda i, j, k, l: (i, j, k, l)),
            scratch_shapes=[
                pltpu.VMEM((h_blk, w_blk * bs), x.dtype),        # cstage
                pltpu.VMEM((h_blk * bs, w_blk * bs), jnp.float32),  # stage
            ],
        ),
        compiler_params=pltpu.CompilerParams(
            dimension_semantics=("parallel", "parallel", "parallel", "parallel"),
            vmem_limit_bytes=vmem_limit,
        ),
        cost_estimate=cost,
    )(perm, x5)


def depth_to_space_ref(x, bs):
    return _depth_to_space_xla(x, bs)


if __name__ == "__main__":
    key = jax.random.PRNGKey(0)
    block_size = 2

    # Main case (Pallas path, lane-dense): n=2, c=8 (=> c_out=2), h=16, w=64
    # -> output (2, 2, 32, 128).
    x = jax.random.normal(key, (2, 8, 16, 64), dtype=jnp.float32)
    out = jax.block_until_ready(depth_to_space(x, block_size))
    ref = depth_to_space_ref(x, block_size)
    np.testing.assert_allclose(np.asarray(out), np.asarray(ref),
                               rtol=0, atol=1e-6)

    # bf16 goes through the MXU permutation path natively.
    xb = x.astype(jnp.bfloat16)
    outb = jax.block_until_ready(depth_to_space(xb, block_size))
    refb = depth_to_space_ref(xb, block_size)
    np.testing.assert_allclose(np.asarray(outb).astype(np.float32),
                               np.asarray(refb).astype(np.float32),
                               rtol=0, atol=1e-6)

    # Tiny spatial map (w*bs < 128): lane-sparse, routed through the XLA path.
    xt = jax.random.normal(key, (2, 4, 16, 16), dtype=jnp.float32)
    outt = jax.block_until_ready(depth_to_space(xt, block_size))
    reft = depth_to_space_ref(xt, block_size)
    np.testing.assert_allclose(np.asarray(outt), np.asarray(reft),
                               rtol=0, atol=0)

    print("KERNEL_OK")
</pallas_src>

<mosaic_0001>
module attributes {stable_mosaic.version = 11 : i64} {
  func.func @_depth_to_space_kernel(%arg0: i32, %arg1: i32, %arg2: i32, %arg3: i32, %arg4: memref<128x128xbf16, #tpu.memory_space<vmem>>, %arg5: memref<1x4x2x16x64xf32, #tpu.memory_space<vmem>>, %arg6: memref<1x2x32x128xf32, #tpu.memory_space<vmem>>, %arg7: memref<16x128xf32, #tpu.memory_space<vmem>>, %arg8: memref<32x128xf32, #tpu.memory_space<vmem>>) attributes {dimension_semantics = [#tpu.dimension_semantics<parallel>, #tpu.dimension_semantics<parallel>, #tpu.dimension_semantics<parallel>, #tpu.dimension_semantics<parallel>], iteration_bounds = array<i64: 2, 1, 1, 1>, scalar_prefetch = 0 : i64, scratch_operands = 2 : i64, tpu.core_type = #tpu.core_type<tc>, window_params = [{pipeline_mode = #tpu.pipeline_mode<synchronous>, transform_indices = @transform_0, window_bounds = array<i64: 128, 128>}, {transform_indices = @transform_1, window_bounds = array<i64: 1, 4, 2, 16, 64>}, {transform_indices = @transform_2, window_bounds = array<i64: 1, 2, 32, 128>}]} {
    %c0 = arith.constant 0 : index
    %c0_0 = arith.constant 0 : index
    %c0_1 = arith.constant 0 : index
    %c0_2 = arith.constant 0 : index
    %c0_3 = arith.constant 0 : index
    %0 = vector.load %arg5[%c0, %c0_0, %c0_1, %c0_2, %c0_3] : memref<1x4x2x16x64xf32, #tpu.memory_space<vmem>>, vector<1x1x1x16x64xf32>
    %1 = vector.shape_cast %0 : vector<1x1x1x16x64xf32> to vector<16x64xf32>
    %c0_4 = arith.constant 0 : index
    %c0_5 = arith.constant 0 : index
    %2 = vector.load %arg7[%c0_4, %c0_5] : memref<16x128xf32, #tpu.memory_space<vmem>>, vector<16x64xf32>
    tpu.vector_store %arg7[%c0_4, %c0_5], %1 {strides = array<i32>} : memref<16x128xf32, #tpu.memory_space<vmem>>, vector<16x64xf32>,
    %c0_6 = arith.constant 0 : index
    %c1 = arith.constant 1 : index
    %c0_7 = arith.constant 0 : index
    %c0_8 = arith.constant 0 : index
    %c0_9 = arith.constant 0 : index
    %3 = vector.load %arg5[%c0_6, %c1, %c0_7, %c0_8, %c0_9] : memref<1x4x2x16x64xf32, #tpu.memory_space<vmem>>, vector<1x1x1x16x64xf32>
    %4 = vector.shape_cast %3 : vector<1x1x1x16x64xf32> to vector<16x64xf32>
    %c0_10 = arith.constant 0 : index
    %c64 = arith.constant 64 : index
    %5 = vector.load %arg7[%c0_10, %c64] : memref<16x128xf32, #tpu.memory_space<vmem>>, vector<16x64xf32>
    tpu.vector_store %arg7[%c0_10, %c64], %4 {strides = array<i32>} : memref<16x128xf32, #tpu.memory_space<vmem>>, vector<16x64xf32>,
    %c0_11 = arith.constant 0 : index
    %c0_12 = arith.constant 0 : index
    %6 = vector.load %arg7[%c0_11, %c0_12] : memref<16x128xf32, #tpu.memory_space<vmem>>, vector<16x128xf32>
    %7 = arith.truncf %6 : vector<16x128xf32> to vector<16x128xbf16>
    %8 = arith.extf %7 : vector<16x128xbf16> to vector<16x128xf32>
    %9 = arith.subf %6, %8 : vector<16x128xf32>
    %10 = arith.truncf %9 : vector<16x128xf32> to vector<16x128xbf16>
    %11 = arith.extf %10 : vector<16x128xbf16> to vector<16x128xf32>
    %12 = arith.subf %9, %11 : vector<16x128xf32>
    %13 = arith.truncf %12 : vector<16x128xf32> to vector<16x128xbf16>
    %c0_13 = arith.constant 0 : index
    %c0_14 = arith.constant 0 : index
    %14 = vector.load %arg4[%c0_13, %c0_14] : memref<128x128xbf16, #tpu.memory_space<vmem>>, vector<128x128xbf16>
    %cst = arith.constant dense<0.000000e+00> : vector<16x128xf32>
    %15 = tpu.matmul %7, %14, %cst {dimension_numbers = #tpu.dot_dimension_numbers<[1], [0], [0], [1], [0, 0, 1, 1], [], []>} : vector<16x128xbf16>, vector<128x128xbf16>, vector<16x128xf32> -> vector<16x128xf32>
    %c0_15 = arith.constant 0 : index
    %c0_16 = arith.constant 0 : index
    %16 = vector.load %arg4[%c0_15, %c0_16] : memref<128x128xbf16, #tpu.memory_space<vmem>>, vector<128x128xbf16>
    %cst_17 = arith.constant dense<0.000000e+00> : vector<16x128xf32>
    %17 = tpu.matmul %10, %16, %cst_17 {dimension_numbers = #tpu.dot_dimension_numbers<[1], [0], [0], [1], [0, 0, 1, 1], [], []>} : vector<16x128xbf16>, vector<128x128xbf16>, vector<16x128xf32> -> vector<16x128xf32>
    %18 = arith.addf %15, %17 : vector<16x128xf32>
    %c0_18 = arith.constant 0 : index
    %c0_19 = arith.constant 0 : index
    %19 = vector.load %arg4[%c0_18, %c0_19] : memref<128x128xbf16, #tpu.memory_space<vmem>>, vector<128x128xbf16>
    %cst_20 = arith.constant dense<0.000000e+00> : vector<16x128xf32>
    %20 = tpu.matmul %13, %19, %cst_20 {dimension_numbers = #tpu.dot_dimension_numbers<[1], [0], [0], [1], [0, 0, 1, 1], [], []>} : vector<16x128xbf16>, vector<128x128xbf16>, vector<16x128xf32> -> vector<16x128xf32>
    %21 = arith.addf %18, %20 : vector<16x128xf32>
    %c0_21 = arith.constant 0 : index
    %c0_22 = arith.constant 0 : index
    %22 = tpu.strided_load %arg8[%c0_21, %c0_22] {strides = array<i32: 2, 1>} : memref<32x128xf32, #tpu.memory_space<vmem>>, vector<16x128xf32>
    tpu.strided_store %arg8[%c0_21, %c0_22], %21 {strides = array<i32: 2, 1>} : memref<32x128xf32, #tpu.memory_space<vmem>>, vector<16x128xf32>
    %c0_23 = arith.constant 0 : index
    %c2 = arith.constant 2 : index
    %c0_24 = arith.constant 0 : index
    %c0_25 = arith.constant 0 : index
    %c0_26 = arith.constant 0 : index
    %23 = vector.load %arg5[%c0_23, %c2, %c0_24, %c0_25, %c0_26] : memref<1x4x2x16x64xf32, #tpu.memory_space<vmem>>, vector<1x1x1x16x64xf32>
    %24 = vector.shape_cast %23 : vector<1x1x1x16x64xf32> to vector<16x64xf32>
    %c0_27 = arith.constant 0 : index
    %c0_28 = arith.constant 0 : index
    %25 = vector.load %arg7[%c0_27, %c0_28] : memref<16x128xf32, #tpu.memory_space<vmem>>, vector<16x64xf32>
    tpu.vector_store %arg7[%c0_27, %c0_28], %24 {strides = array<i32>} : memref<16x128xf32, #tpu.memory_space<vmem>>, vector<16x64xf32>,
    %c0_29 = arith.constant 0 : index
    %c3 = arith.constant 3 : index
    %c0_30 = arith.constant 0 : index
    %c0_31 = arith.constant 0 : index
    %c0_32 = arith.constant 0 : index
    %26 = vector.load %arg5[%c0_29, %c3, %c0_30, %c0_31, %c0_32] : memref<1x4x2x16x64xf32, #tpu.memory_space<vmem>>, vector<1x1x1x16x64xf32>
    %27 = vector.shape_cast %26 : vector<1x1x1x16x64xf32> to vector<16x64xf32>
    %c0_33 = arith.constant 0 : index
    %c64_34 = arith.constant 64 : index
    %28 = vector.load %arg7[%c0_33, %c64_34] : memref<16x128xf32, #tpu.memory_space<vmem>>, vector<16x64xf32>
    tpu.vector_store %arg7[%c0_33, %c64_34], %27 {strides = array<i32>} : memref<16x128xf32, #tpu.memory_space<vmem>>, vector<16x64xf32>,
    %c0_35 = arith.constant 0 : index
    %c0_36 = arith.constant 0 : index
    %29 = vector.load %arg7[%c0_35, %c0_36] : memref<16x128xf32, #tpu.memory_space<vmem>>, vector<16x128xf32>
    %30 = arith.truncf %29 : vector<16x128xf32> to vector<16x128xbf16>
    %31 = arith.extf %30 : vector<16x128xbf16> to vector<16x128xf32>
    %32 = arith.subf %29, %31 : vector<16x128xf32>
    %33 = arith.truncf %32 : vector<16x128xf32> to vector<16x128xbf16>
    %34 = arith.extf %33 : vector<16x128xbf16> to vector<16x128xf32>
    %35 = arith.subf %32, %34 : vector<16x128xf32>
    %36 = arith.truncf %35 : vector<16x128xf32> to vector<16x128xbf16>
    %c0_37 = arith.constant 0 : index
    %c0_38 = arith.constant 0 : index
    %37 = vector.load %arg4[%c0_37, %c0_38] : memref<128x128xbf16, #tpu.memory_space<vmem>>, vector<128x128xbf16>
    %cst_39 = arith.constant dense<0.000000e+00> : vector<16x128xf32>
    %38 = tpu.matmul %30, %37, %cst_39 {dimension_numbers = #tpu.dot_dimension_numbers<[1], [0], [0], [1], [0, 0, 1, 1], [], []>} : vector<16x128xbf16>, vector<128x128xbf16>, vector<16x128xf32> -> vector<16x128xf32>
    %c0_40 = arith.constant 0 : index
    %c0_41 = arith.constant 0 : index
    %39 = vector.load %arg4[%c0_40, %c0_41] : memref<128x128xbf16, #tpu.memory_space<vmem>>, vector<128x128xbf16>
    %cst_42 = arith.constant dense<0.000000e+00> : vector<16x128xf32>
    %40 = tpu.matmul %33, %39, %cst_42 {dimension_numbers = #tpu.dot_dimension_numbers<[1], [0], [0], [1], [0, 0, 1, 1], [], []>} : vector<16x128xbf16>, vector<128x128xbf16>, vector<16x128xf32> -> vector<16x128xf32>
    %41 = arith.addf %38, %40 : vector<16x128xf32>
    %c0_43 = arith.constant 0 : index
    %c0_44 = arith.constant 0 : index
    %42 = vector.load %arg4[%c0_43, %c0_44] : memref<128x128xbf16, #tpu.memory_space<vmem>>, vector<128x128xbf16>
    %cst_45 = arith.constant dense<0.000000e+00> : vector<16x128xf32>
    %43 = tpu.matmul %36, %42, %cst_45 {dimension_numbers = #tpu.dot_dimension_numbers<[1], [0], [0], [1], [0, 0, 1, 1], [], []>} : vector<16x128xbf16>, vector<128x128xbf16>, vector<16x128xf32> -> vector<16x128xf32>
    %44 = arith.addf %41, %43 : vector<16x128xf32>
    %c1_46 = arith.constant 1 : index
    %c0_47 = arith.constant 0 : index
    %45 = tpu.strided_load %arg8[%c1_46, %c0_47] {strides = array<i32: 2, 1>} : memref<32x128xf32, #tpu.memory_space<vmem>>, vector<16x128xf32>
    tpu.strided_store %arg8[%c1_46, %c0_47], %44 {strides = array<i32: 2, 1>} : memref<32x128xf32, #tpu.memory_space<vmem>>, vector<16x128xf32>
    %c0_48 = arith.constant 0 : index
    %c0_49 = arith.constant 0 : index
    %46 = vector.load %arg8[%c0_48, %c0_49] : memref<32x128xf32, #tpu.memory_space<vmem>>, vector<32x128xf32>
    %c0_50 = arith.constant 0 : index
    %c0_51 = arith.constant 0 : index
    %c0_52 = arith.constant 0 : index
    %c0_53 = arith.constant 0 : index
    %47 = vector.load %arg6[%c0_50, %c0_51, %c0_52, %c0_53] : memref<1x2x32x128xf32, #tpu.memory_space<vmem>>, vector<1x1x32x128xf32>
    %48 = vector.shape_cast %47 : vector<1x1x32x128xf32> to vector<32x128xf32>
    %49 = vector.shape_cast %46 : vector<32x128xf32> to vector<1x1x32x128xf32>
    tpu.vector_store %arg6[%c0_50, %c0_51, %c0_52, %c0_53], %49 {strides = array<i32>} : memref<1x2x32x128xf32, #tpu.memory_space<vmem>>, vector<1x1x32x128xf32>,
    %c0_54 = arith.constant 0 : index
    %c0_55 = arith.constant 0 : index
    %c1_56 = arith.constant 1 : index
    %c0_57 = arith.constant 0 : index
    %c0_58 = arith.constant 0 : index
    %50 = vector.load %arg5[%c0_54, %c0_55, %c1_56, %c0_57, %c0_58] : memref<1x4x2x16x64xf32, #tpu.memory_space<vmem>>, vector<1x1x1x16x64xf32>
    %51 = vector.shape_cast %50 : vector<1x1x1x16x64xf32> to vector<16x64xf32>
    %c0_59 = arith.constant 0 : index
    %c0_60 = arith.constant 0 : index
    %52 = vector.load %arg7[%c0_59, %c0_60] : memref<16x128xf32, #tpu.memory_space<vmem>>, vector<16x64xf32>
    tpu.vector_store %arg7[%c0_59, %c0_60], %51 {strides = array<i32>} : memref<16x128xf32, #tpu.memory_space<vmem>>, vector<16x64xf32>,
    %c0_61 = arith.constant 0 : index
    %c1_62 = arith.constant 1 : index
    %c1_63 = arith.constant 1 : index
    %c0_64 = arith.constant 0 : index
    %c0_65 = arith.constant 0 : index
    %53 = vector.load %arg5[%c0_61, %c1_62, %c1_63, %c0_64, %c0_65] : memref<1x4x2x16x64xf32, #tpu.memory_space<vmem>>, vector<1x1x1x16x64xf32>
    %54 = vector.shape_cast %53 : vector<1x1x1x16x64xf32> to vector<16x64xf32>
    %c0_66 = arith.constant 0 : index
    %c64_67 = arith.constant 64 : index
    %55 = vector.load %arg7[%c0_66, %c64_67] : memref<16x128xf32, #tpu.memory_space<vmem>>, vector<16x64xf32>
    tpu.vector_store %arg7[%c0_66, %c64_67], %54 {strides = array<i32>} : memref<16x128xf32, #tpu.memory_space<vmem>>, vector<16x64xf32>,
    %c0_68 = arith.constant 0 : index
    %c0_69 = arith.constant 0 : index
    %56 = vector.load %arg7[%c0_68, %c0_69] : memref<16x128xf32, #tpu.memory_space<vmem>>, vector<16x128xf32>
    %57 = arith.truncf %56 : vector<16x128xf32> to vector<16x128xbf16>
    %58 = arith.extf %57 : vector<16x128xbf16> to vector<16x128xf32>
    %59 = arith.subf %56, %58 : vector<16x128xf32>
    %60 = arith.truncf %59 : vector<16x128xf32> to vector<16x128xbf16>
    %61 = arith.extf %60 : vector<16x128xbf16> to vector<16x128xf32>
    %62 = arith.subf %59, %61 : vector<16x128xf32>
    %63 = arith.truncf %62 : vector<16x128xf32> to vector<16x128xbf16>
    %c0_70 = arith.constant 0 : index
    %c0_71 = arith.constant 0 : index
    %64 = vector.load %arg4[%c0_70, %c0_71] : memref<128x128xbf16, #tpu.memory_space<vmem>>, vector<128x128xbf16>
    %cst_72 = arith.constant dense<0.000000e+00> : vector<16x128xf32>
    %65 = tpu.matmul %57, %64, %cst_72 {dimension_numbers = #tpu.dot_dimension_numbers<[1], [0], [0], [1], [0, 0, 1, 1], [], []>} : vector<16x128xbf16>, vector<128x128xbf16>, vector<16x128xf32> -> vector<16x128xf32>
    %c0_73 = arith.constant 0 : index
    %c0_74 = arith.constant 0 : index
    %66 = vector.load %arg4[%c0_73, %c0_74] : memref<128x128xbf16, #tpu.memory_space<vmem>>, vector<128x128xbf16>
    %cst_75 = arith.constant dense<0.000000e+00> : vector<16x128xf32>
    %67 = tpu.matmul %60, %66, %cst_75 {dimension_numbers = #tpu.dot_dimension_numbers<[1], [0], [0], [1], [0, 0, 1, 1], [], []>} : vector<16x128xbf16>, vector<128x128xbf16>, vector<16x128xf32> -> vector<16x128xf32>
    %68 = arith.addf %65, %67 : vector<16x128xf32>
    %c0_76 = arith.constant 0 : index
    %c0_77 = arith.constant 0 : index
    %69 = vector.load %arg4[%c0_76, %c0_77] : memref<128x128xbf16, #tpu.memory_space<vmem>>, vector<128x128xbf16>
    %cst_78 = arith.constant dense<0.000000e+00> : vector<16x128xf32>
    %70 = tpu.matmul %63, %69, %cst_78 {dimension_numbers = #tpu.dot_dimension_numbers<[1], [0], [0], [1], [0, 0, 1, 1], [], []>} : vector<16x128xbf16>, vector<128x128xbf16>, vector<16x128xf32> -> vector<16x128xf32>
    %71 = arith.addf %68, %70 : vector<16x128xf32>
    %c0_79 = arith.constant 0 : index
    %c0_80 = arith.constant 0 : index
    %72 = tpu.strided_load %arg8[%c0_79, %c0_80] {strides = array<i32: 2, 1>} : memref<32x128xf32, #tpu.memory_space<vmem>>, vector<16x128xf32>
    tpu.strided_store %arg8[%c0_79, %c0_80], %71 {strides = array<i32: 2, 1>} : memref<32x128xf32, #tpu.memory_space<vmem>>, vector<16x128xf32>
    %c0_81 = arith.constant 0 : index
    %c2_82 = arith.constant 2 : index
    %c1_83 = arith.constant 1 : index
    %c0_84 = arith.constant 0 : index
    %c0_85 = arith.constant 0 : index
    %73 = vector.load %arg5[%c0_81, %c2_82, %c1_83, %c0_84, %c0_85] : memref<1x4x2x16x64xf32, #tpu.memory_space<vmem>>, vector<1x1x1x16x64xf32>
    %74 = vector.shape_cast %73 : vector<1x1x1x16x64xf32> to vector<16x64xf32>
    %c0_86 = arith.constant 0 : index
    %c0_87 = arith.constant 0 : index
    %75 = vector.load %arg7[%c0_86, %c0_87] : memref<16x128xf32, #tpu.memory_space<vmem>>, vector<16x64xf32>
    tpu.vector_store %arg7[%c0_86, %c0_87], %74 {strides = array<i32>} : memref<16x128xf32, #tpu.memory_space<vmem>>, vector<16x64xf32>,
    %c0_88 = arith.constant 0 : index
    %c3_89 = arith.constant 3 : index
    %c1_90 = arith.constant 1 : index
    %c0_91 = arith.constant 0 : index
    %c0_92 = arith.constant 0 : index
    %76 = vector.load %arg5[%c0_88, %c3_89, %c1_90, %c0_91, %c0_92] : memref<1x4x2x16x64xf32, #tpu.memory_space<vmem>>, vector<1x1x1x16x64xf32>
    %77 = vector.shape_cast %76 : vector<1x1x1x16x64xf32> to vector<16x64xf32>
    %c0_93 = arith.constant 0 : index
    %c64_94 = arith.constant 64 : index
    %78 = vector.load %arg7[%c0_93, %c64_94] : memref<16x128xf32, #tpu.memory_space<vmem>>, vector<16x64xf32>
    tpu.vector_store %arg7[%c0_93, %c64_94], %77 {strides = array<i32>} : memref<16x128xf32, #tpu.memory_space<vmem>>, vector<16x64xf32>,
    %c0_95 = arith.constant 0 : index
    %c0_96 = arith.constant 0 : index
    %79 = vector.load %arg7[%c0_95, %c0_96] : memref<16x128xf32, #tpu.memory_space<vmem>>, vector<16x128xf32>
    %80 = arith.truncf %79 : vector<16x128xf32> to vector<16x128xbf16>
    %81 = arith.extf %80 : vector<16x128xbf16> to vector<16x128xf32>
    %82 = arith.subf %79, %81 : vector<16x128xf32>
    %83 = arith.truncf %82 : vector<16x128xf32> to vector<16x128xbf16>
    %84 = arith.extf %83 : vector<16x128xbf16> to vector<16x128xf32>
    %85 = arith.subf %82, %84 : vector<16x128xf32>
    %86 = arith.truncf %85 : vector<16x128xf32> to vector<16x128xbf16>
    %c0_97 = arith.constant 0 : index
    %c0_98 = arith.constant 0 : index
    %87 = vector.load %arg4[%c0_97, %c0_98] : memref<128x128xbf16, #tpu.memory_space<vmem>>, vector<128x128xbf16>
    %cst_99 = arith.constant dense<0.000000e+00> : vector<16x128xf32>
    %88 = tpu.matmul %80, %87, %cst_99 {dimension_numbers = #tpu.dot_dimension_numbers<[1], [0], [0], [1], [0, 0, 1, 1], [], []>} : vector<16x128xbf16>, vector<128x128xbf16>, vector<16x128xf32> -> vector<16x128xf32>
    %c0_100 = arith.constant 0 : index
    %c0_101 = arith.constant 0 : index
    %89 = vector.load %arg4[%c0_100, %c0_101] : memref<128x128xbf16, #tpu.memory_space<vmem>>, vector<128x128xbf16>
    %cst_102 = arith.constant dense<0.000000e+00> : vector<16x128xf32>
    %90 = tpu.matmul %83, %89, %cst_102 {dimension_numbers = #tpu.dot_dimension_numbers<[1], [0], [0], [1], [0, 0, 1, 1], [], []>} : vector<16x128xbf16>, vector<128x128xbf16>, vector<16x128xf32> -> vector<16x128xf32>
    %91 = arith.addf %88, %90 : vector<16x128xf32>
    %c0_103 = arith.constant 0 : index
    %c0_104 = arith.constant 0 : index
    %92 = vector.load %arg4[%c0_103, %c0_104] : memref<128x128xbf16, #tpu.memory_space<vmem>>, vector<128x128xbf16>
    %cst_105 = arith.constant dense<0.000000e+00> : vector<16x128xf32>
    %93 = tpu.matmul %86, %92, %cst_105 {dimension_numbers = #tpu.dot_dimension_numbers<[1], [0], [0], [1], [0, 0, 1, 1], [], []>} : vector<16x128xbf16>, vector<128x128xbf16>, vector<16x128xf32> -> vector<16x128xf32>
    %94 = arith.addf %91, %93 : vector<16x128xf32>
    %c1_106 = arith.constant 1 : index
    %c0_107 = arith.constant 0 : index
    %95 = tpu.strided_load %arg8[%c1_106, %c0_107] {strides = array<i32: 2, 1>} : memref<32x128xf32, #tpu.memory_space<vmem>>, vector<16x128xf32>
    tpu.strided_store %arg8[%c1_106, %c0_107], %94 {strides = array<i32: 2, 1>} : memref<32x128xf32, #tpu.memory_space<vmem>>, vector<16x128xf32>
    %c0_108 = arith.constant 0 : index
    %c0_109 = arith.constant 0 : index
    %96 = vector.load %arg8[%c0_108, %c0_109] : memref<32x128xf32, #tpu.memory_space<vmem>>, vector<32x128xf32>
    %c0_110 = arith.constant 0 : index
    %c1_111 = arith.constant 1 : index
    %c0_112 = arith.constant 0 : index
    %c0_113 = arith.constant 0 : index
    %97 = vector.load %arg6[%c0_110, %c1_111, %c0_112, %c0_113] : memref<1x2x32x128xf32, #tpu.memory_space<vmem>>, vector<1x1x32x128xf32>
    %98 = vector.shape_cast %97 : vector<1x1x32x128xf32> to vector<32x128xf32>
    %99 = vector.shape_cast %96 : vector<32x128xf32> to vector<1x1x32x128xf32>
    tpu.vector_store %arg6[%c0_110, %c1_111, %c0_112, %c0_113], %99 {strides = array<i32>} : memref<1x2x32x128xf32, #tpu.memory_space<vmem>>, vector<1x1x32x128xf32>,
    return
  }
  func.func @transform_0(%arg0: i32, %arg1: i32, %arg2: i32, %arg3: i32) -> (i32, i32) {
    %c0_i32 = arith.constant 0 : i32
    %c0_i32_0 = arith.constant 0 : i32
    %c0_i32_1 = arith.constant 0 : i32
    return %c0_i32, %c0_i32_0 : i32, i32
  }
  func.func @transform_1(%arg0: i32, %arg1: i32, %arg2: i32, %arg3: i32) -> (i32, i32, i32, i32, i32) {
    %c0_i32 = arith.constant 0 : i32
    %c0_i32_0 = arith.constant 0 : i32
    return %arg0, %c0_i32, %arg1, %arg2, %arg3 : i32, i32, i32, i32, i32
  }
  func.func @transform_2(%arg0: i32, %arg1: i32, %arg2: i32, %arg3: i32) -> (i32, i32, i32, i32) {
    %c0_i32 = arith.constant 0 : i32
    return %arg0, %arg1, %arg2, %arg3 : i32, i32, i32, i32
  }
}

</mosaic_0001>

<bundles_post_ra>
// kernel: tpu_custom_call.1
= control target key start
LH: loop header
LB: loop body
LE: loop exit
PB: predicated region body
PF: predicated region fallthrough
CT: control target
= control target key end

     0   :  { %7 = vsyncpa [#allocation5], 0  ;;  %s2612_s0 = inlined_call_operand.hbm [shape: bf16[128,128], index: 0, kind: input, shape index: {}]   ;;  %s2613_s1 = inlined_call_operand.hbm [shape: f32[2,4,2,16,64], index: 1, kind: input, shape index: {}]   ;;  %s2614_s2 = inlined_call_operand.hbm [shape: f32[2,2,32,128], index: 2, kind: output, shape index: {}]  }
   0x1   :  { %8 = vsyncpa [#allocation8], 0 }
   0x2   :  { %10 = vsyncpa [#allocation8 + $0x1], 0 }
   0x3   :  { %11 = vsyncpa [#allocation6], 0 }
   0x4   :  { %13 = vsyncpa [#allocation6 + $0x1], 0  ;;  %s2002_s9 = smov 0   ;;  %s2004_s10 = smov 0  }
   0x5   :  { %s2006_s11 = smov 0   ;;  %s2008_s12 = smov 0  }
   0x6   :  { %s2010_s13 = smov 0   ;;  %s2012_s14 = smov 0  }
   0x7 LB: > { %s1266_s15 = sadd.s32 4294967295, %s1973_s14   ;;  %s1267_s16 = sadd.s32 4294967294, %s1973_s14   ;;  %s1973_s14 = sphi %s2012_s14, %s19_s14   ;;  %s1969_s13 = sphi %s2010_s13, %s2638_s13   ;;  %s1965_s12 = sphi %s2008_s12, %s2637_s12   ;;  %s1961_s11 = sphi %s2006_s11, %s2636_s11   ;;  %s1957_s10 = sphi %s2004_s10, %s2635_s10   ;;  %s1953_s9 = sphi %s2002_s9, %s2634_s9  }
   0x8   : > { %p92_p0 = scmp.ne.s32.totalorder %s1957_s10, %s1953_s9  ;;  %p2036_p1 = scmp.eq.s32.totalorder %s1266_s15, 0 }
   0x9   : > { %p2040_p2 = scmp.eq.s32.totalorder %s1266_s15, 1  ;;  %p128_p3 = scmp.eq.s32.totalorder %s1267_s16, 1 }
   0xa   : > { %s2619_s17 = scalar_select %p2036_p1, 1, 0 }
   0xb   : > { %s2620_s18 = scalar_select %p2040_p2, 1, 0 }
   0xc   : > { %p2046_p4 = por %p2036_p1, %p92_p0  ;;  %p1268_p5 = scmp.ge.s32.totalorder %s1973_s14, 1 }
   0xd   : > { %p2051_p6 = por %p128_p3, %p92_p0  ;;  %p135_p7 = scmp.lt.s32.totalorder %s1973_s14, 3 }
   0xe   : > { %s2621_s19 = scalar_select %p2046_p4, 1, 0 }
   0xf   : > { %s2622_s20 = scalar_select %p2051_p6, 1, 0 }
  0x10   : > { %p2056_p8 = pnand %p1268_p5, %p135_p7  ;;  %s1975_s22 = smov [#allocation4]  }
  0x11   : > { %s147_s23 = sshll.u32 %s1975_s22, 4  ;;  %s45_s25 = sadd.s32 1, %s1969_s13  ;;  %s148_s23 = int_to_ptr.vmem [resolvable:$true] %s147_s23 }
  0x12   : > { %s2623_s21 = scalar_select %p2056_p8, 1, 0 }
  0x13   : > { %p1723_p9 = pneg %p2056_p8  ;;  %s1829_s28 = scalar_lea.hbm %s2612_s0, 1024 }
  0x14   : > { %p1830_p12 = scmp.ne.s32.totalorder %s2612_s0, %s1829_s28  ;;  %p1836_p5 = scmp.lt.u32.totalorder %s1829_s28, %s2612_s0 }
  0x15   : > { %p2065_p11 = pnand %p1723_p9, %p2036_p1 }
  0x17   : > { %p1831_p13 = pneg %p2065_p11 }
  0x19   : > { %p1832_p0 = pnand %p1831_p13, %p1830_p12 }
  0x1b   : > { %p1833_p3 = pneg %p1832_p0 }
  0x1d   : > { %p1838_p7 = pnand %p1836_p5, %p1833_p3 }
  0x1f   : > { %1841 = shalt.err (!%p1838_p7)
}
  0x20   : > { %s1842_s5 = scalar_lea.vmem %s148_s23, 1024  ;;  %p1850_p4 = scmp.lt.s32.totalorder %s148_s23, %s148_s23 }
  0x21   : > { %p1843_p9 = scmp.ne.s32.totalorder %s148_s23, %s1842_s5  ;;  %p1851_p1 = scmp.lt.s32.totalorder %s1842_s5, %s1842_s5 }
  0x23   : > { %p1845_p10 = pnand %p1843_p9, %p1831_p13  ;;  %p1852_p8 = por %p1851_p1, %p1850_p4 }
  0x25   : > { %p1846_p6 = pneg %p1845_p10 }
  0x27   : > { %p1853_p2 = pnand %p1852_p8, %p1846_p6 }
  0x29   : > { %1856 = shalt.err (!%p1853_p2)
}
  0x2a   : > { %s1976_s6 = smov 64   ;;  %s1977_s7 = smov 4  }
  0x2b   : > { %1726 = dma.hbm_to_vmem [thread:$0]  (!%p2065_p11), %s2612_s0, 1024, %s148_s23, [#allocation5], %s1976_s6, %s1976_s6, %s1977_s7  }
  0x2c   : > { %p47_p1 = scmp.ge.s32.totalorder %s45_s25, 2  ;;  %s79_s16 = sadd.s32 1, %s1961_s11 }
  0x2d   : > { %p86_p2 = scmp.ne.s32.totalorder %s1961_s11, %s1957_s10  ;;  %p87_p4 = scmp.eq.s32.totalorder %s1973_s14, 0 }
  0x2e   : > { %s2640_s25 = smov (%p47_p1, %s45_s25), 0  ;;  %p2626_p8 = scmp.ne.s32.totalorder %s2620_s18, 0 }
  0x2f   : > { %p2092_p6 = por %p87_p4, %p86_p2  ;;  %s70_s24 = ssub.s32 %s1969_s13, %s2640_s25 }
  0x30   : > { %p2098_p10 = por %p2626_p8, %p86_p2  ;;  %p1736_p12 = scmp.lt.s32.totalorder %s1973_s14, 2 }
  0x31   : > { %p77_p11 = scmp.eq.s32.totalorder %s70_s24, 0  ;;  %s161_s23 = sand.u32 1, %s1961_s11  }
  0x32   : > { %s1271_s27 = sshll.u32 %s161_s23, 7  ;;  %s1333_s29 = sshll.u32 %s1969_s13, 11 }
  0x33   : > { %s2107_s28 = scalar_select %p77_p11, %s1961_s11, %s79_s16  }
  0x34   : > { %s2113_s4 = scalar_lea.hbm %s2613_s1, %s1333_s29  ;;  %s165_s18 = scalar_lea.vmem [#allocation7], %s1271_s27 }
  0x35   : > { %s178_s5 = sshll.u32 %s165_s18, 4  ;;  %p2119_p13 = pnand %p1736_p12, %p2092_p6  ;;  %s2115_s5 = int_to_ptr.vmem [resolvable:$true] %s178_s5 }
  0x36   : > { %s2123_s7 = scalar_lea.sflag [#allocation8], %s161_s23  ;;  %s1857_s8 = scalar_lea.hbm %s2113_s4, 2048 }
  0x37   : > { %p1858_p0 = scmp.ne.s32.totalorder %s2113_s4, %s1857_s8  ;;  %p1859_p3 = pneg %p2119_p13 }
  0x38   : > { %s1862_s22 = scalar_lea.hbm %s2613_s1, 4096  ;;  %p1863_p9 = scmp.lt.u32.totalorder %s2113_s4, %s2613_s1 }
  0x39   : > { %p1860_p5 = pnand %p1859_p3, %p1858_p0  ;;  %p1864_p1 = scmp.lt.u32.totalorder %s1862_s22, %s1857_s8 }
  0x3a   : > { %p1866_p4 = scmp.lt.u32.totalorder %s1857_s8, %s2113_s4 }
  0x3b   : > { %p1861_p7 = pneg %p1860_p5  ;;  %p1865_p2 = por %p1864_p1, %p1863_p9 }
  0x3d   : > { %p1867_p6 = por %p1866_p4, %p1865_p2 }
  0x3f   : > { %p1868_p8 = pnand %p1867_p6, %p1861_p7 }
  0x41   : > { %1871 = shalt.err (!%p1868_p8)
}
  0x42   : > { %s1872_s23 = scalar_lea.vmem %s2115_s5, 2048  ;;  %s1978_s29 = smov [#allocation7]  }
  0x43   : > { %p1873_p12 = scmp.ne.s32.totalorder %s2115_s5, %s1872_s23  ;;  %s1877_s30 = sshll.u32 %s1978_s29, 4  ;;  %s1878_s30 = int_to_ptr.vmem [resolvable:$false] %s1877_s30 }
  0x44   : > { %s1879_s3 = scalar_lea.vmem %s1878_s30, 4096  ;;  %p1880_p5 = scmp.lt.s32.totalorder %s2115_s5, %s1878_s30 }
  0x45   : > { %p1875_p11 = pnand %p1873_p12, %p1859_p3  ;;  %p1881_p9 = scmp.lt.s32.totalorder %s1879_s3, %s1872_s23 }
  0x47   : > { %p1876_p0 = pneg %p1875_p11  ;;  %p1882_p1 = por %p1881_p9, %p1880_p5 }
  0x49   : > { %p1883_p2 = pnand %p1882_p1, %p1876_p0 }
  0x4b   : > { %1886 = shalt.err (!%p1883_p2)
}
  0x4c   : > { %s1979_s18 = smov 128   ;;  %s1980_s8 = smov 8  }
  0x4d   : > { %1730 = dma.hbm_to_vmem [thread:$0]  (!%p2119_p13), %s2113_s4, 2048, %s2115_s5, %s2123_s7, %s1979_s18, %s1979_s18, %s1980_s8  }
  0x4e   : > { %p2629_p3 = scmp.ne.s32.totalorder %s2623_s21, 0 }
  0x4f   : > { %p2630_p7 = scmp.ne.s32.totalorder (!%p2629_p3), %s2619_s17, 0 }
  0x50   : > { %190 = sbr.rel (%p2629_p3) target bundleno = 635 (0x27b), region = 28 }
  0x57   : > { %1940 = dma.done.wait (%p2630_p7), [#allocation5], 1024  }
  0x58   : > { %1942 = vsyncadd (%p2630_p7), [#allocation5], 4294966272  ;;  %s2158_s15 = sand.u32 1, %s1957_s10   ;;  %p2631_p13 = scmp.ne.s32.totalorder %s2621_s19, 0 }
  0x59   : > { %s1276_s16 = sshll.u32 %s2158_s15, 7  ;;  %s197_s22 = scalar_lea.sflag [#allocation8], %s2158_s15 }
  0x5a   : > { %s2162_s24 = scalar_lea.vmem [#allocation7], %s1276_s16 }
  0x5b   : > { %1944 = dma.done.wait (%p2631_p13), %s197_s22, 2048  }
  0x5c   : > { %1946 = vsyncadd (%p2631_p13), %s197_s22, 4294965248  ;;  %v1981_v0 = vmov 0.0   ;;  %v1278_v1 = vld [vmem:[%s2162_s24 + $0x20] sm:$0xff]  ;;  %s1982_s17 = smov 64   ;;  %v1279_v3 = vld [vmem:[%s2162_s24 + $0x28] sm:$0xff]  ;;  %vm1983_vm0 = vmmov 0  }
  0x5d   : > { %1443 = vmatprep.subr.bf16.mxu0 %v1981_v0  ;;  %1503 = vmatprep.subr.bf16.mxu1 %v1981_v0  ;;  %v1290_v2 = vld [vmem:[%s2162_s24 + $0x60] sm:$0xff]  ;;  %v1291_v4 = vld [vmem:[%s2162_s24 + $0x68] sm:$0xff]  ;;  %v1303_v6 = vld [vmem:[%s2162_s24 + $0x38] sm:$0xff]  ;;  %vm228_vm1 = vcmask 523264   ;;  %vm242_vm2 = vcmask 1048064   ;;  %s1277_s19 = sshll.u32 %s2158_s15, 6 }
  0x5e   : > { %236 = vrot.lane.b32.xlu0 %v1278_v1, %s1982_s17  ;;  %460 = vrot.lane.b32.xlu1 %v1290_v2, %s1982_s17  ;;  %v2180_v5 = vld [vmem:[#allocation4] sm:$0xff]   ;;  %v1302_v7 = vld [vmem:[%s2162_s24 + $0x30] sm:$0xff]  ;;  %v2186_v8 = vld [vmem:[#allocation4 + $0x8] sm:$0xff]   ;;  %s220_s21 = scalar_lea.vmem [#allocation9], %s1277_s19  ;;  %s1334_s4 = sshll.u32 %s1965_s12, 10 }
  0x5f   : > { %1459 = vmatprep.mubr.msk.bf16.mxu0 %vm1983_vm0, %v1981_v0  ;;  %1519 = vmatprep.mubr.msk.bf16.mxu1 %vm1983_vm0, %v1981_v0  ;;  %v2189_v9 = vld [vmem:[#allocation4] sm:$0xff]   ;;  %v1315_v11 = vld [vmem:[%s2162_s24 + $0x78] sm:$0xff]  ;;  %v1314_v12 = vld [vmem:[%s2162_s24 + $0x70] sm:$0xff]  ;;  %s1155_s5 = sshll.u32 %s220_s21, 4  ;;  %s2561_s27 = scalar_lea.hbm %s2614_s2, %s1334_s4  ;;  %s2563_s5 = int_to_ptr.vmem [resolvable:$true] %s1155_s5 }
  0x60   : > { %1444 = vmatpush3.bf16.msra.mxu0 %v2180_v5  ;;  %v226_v10 = vld [vmem:[%s2162_s24] sm:$0xff]  ;;  %1504 = vmatpush3.bf16.msra.mxu1 %v2189_v9  ;;  %v2197_v13 = vld [vmem:[#allocation4 + $0x8] sm:$0xff]   ;;  %v2203_v15 = vld [vmem:[#allocation4 + $0x10] sm:$0xff]   ;;  %s1136_s12 = scalar_lea.sflag [#allocation6], %s2158_s15  ;;  %s1887_s23 = scalar_lea.vmem %s2563_s5, 1024 }
  0x61   : > { %1445 = vmatprep.subr.bf16.mxu0 %v1981_v0  ;;  %229 = vst.msk [vmem:[#allocation2] sm:$0xff] %vm228_vm1, %v226_v10  ;;  %v227_v14 = vld [vmem:[%s2162_s24 + $0x8] sm:$0xff]  ;;  %1505 = vmatprep.subr.bf16.mxu1 %v1981_v0  ;;  %v2209_v16 = vld [vmem:[#allocation4 + $0x10] sm:$0xff]   ;;  %v2214_v17 = vld [vmem:[#allocation4 + $0x18] sm:$0xff]   ;;  %p1888_p4 = scmp.ne.s32.totalorder %s2563_s5, %s1887_s23  ;;  %s1984_s29 = smov [#allocation9]  }
  0x62   : > { %238 = vrot.lane.b32.xlu0 %v1279_v3, %s1982_s17  ;;  %462 = vrot.lane.b32.xlu1 %v1291_v4, %s1982_s17  ;;  %230 = vst.msk [vmem:[#allocation2 + $0x8] sm:$0xff] %vm228_vm1, %v227_v14  ;;  %v2219_v18 = vld [vmem:[#allocation4 + $0x18] sm:$0xff]   ;;  %v2223_v19 = vld [vmem:[#allocation4 + $0x20] sm:$0xff]   ;;  %v2228_v21 = vld [vmem:[#allocation4 + $0x28] sm:$0xff]   ;;  %s1891_s30 = sshll.u32 %s1984_s29, 4  ;;  %s1892_s30 = int_to_ptr.vmem [resolvable:$false] %s1891_s30 }
  0x63   : > { %v2226_v20 = vld [vmem:[#allocation4 + $0x20] sm:$0xff]   ;;  %v2233_v22 = vld [vmem:[#allocation4 + $0x28] sm:$0xff]   ;;  %v2236_v23 = vld [vmem:[#allocation4 + $0x30] sm:$0xff]   ;;  %p1889_p6 = pnand %p1888_p4, %p2098_p10  ;;  %s1893_s3 = scalar_lea.vmem %s1892_s30, 2048 }
  0x64   : > { %1446 = vmatpush3.bf16.msra.mxu0 %v2186_v8  ;;  %1506 = vmatpush3.bf16.msra.mxu1 %v2197_v13  ;;  %v2241_v24 = vld [vmem:[#allocation4 + $0x30] sm:$0xff]   ;;  %v2247_v25 = vld [vmem:[#allocation4 + $0x38] sm:$0xff]   ;;  %v1288_v30 = vld [vmem:[%s2162_s24 + $0x40] sm:$0xff]  ;;  %p1894_p12 = scmp.lt.s32.totalorder %s2563_s5, %s1892_s30  ;;  %p1895_p11 = scmp.lt.s32.totalorder %s1893_s3, %s1887_s23 }
  0x65   : > { %1447 = vmatprep.subr.bf16.mxu0 %v1981_v0  ;;  %1507 = vmatprep.subr.bf16.mxu1 %v1981_v0  ;;  %v2251_v26 = vld [vmem:[#allocation4 + $0x38] sm:$0xff]   ;;  %v1289_v32 = vld [vmem:[%s2162_s24 + $0x48] sm:$0xff]  ;;  %v1300_v38 = vld [vmem:[%s2162_s24 + $0x10] sm:$0xff]  ;;  %p1890_p8 = pneg %p1889_p6 }
  0x66   : > { %694 = vrot.lane.b32.xlu1 %v1303_v6, %s1982_s17  ;;  %692 = vrot.lane.b32.xlu0 %v1302_v7, %s1982_s17  ;;  %v1301_v44 = vld [vmem:[%s2162_s24 + $0x18] sm:$0xff]  ;;  %v1312_v50 = vld [vmem:[%s2162_s24 + $0x50] sm:$0xff]  ;;  %p1896_p0 = por %p1895_p11, %p1894_p12 }
  0x67   : > { %v1313_v56 = vld [vmem:[%s2162_s24 + $0x58] sm:$0xff] }
  0x68   : > { %1448 = vmatpush3.bf16.msra.mxu0 %v2203_v15  ;;  %1508 = vmatpush3.bf16.msra.mxu1 %v2209_v16  ;;  %p1897_p5 = pnand %p1896_p0, %p1890_p8 }
  0x69   : > { %1449 = vmatprep.subr.bf16.mxu0 %v1981_v0  ;;  %1509 = vmatprep.subr.bf16.mxu1 %v1981_v0 }
  0x6a   : > { %916 = vrot.lane.b32.xlu1 %v1315_v11, %s1982_s17  ;;  %914 = vrot.lane.b32.xlu0 %v1314_v12, %s1982_s17  ;;  %v2389_v11 = vld [vmem:[#allocation4] sm:$0xff]  }
  0x6c   : > { %1450 = vmatpush3.bf16.msra.mxu0 %v2214_v17  ;;  %1510 = vmatpush3.bf16.msra.mxu1 %v2219_v18 }
  0x6d   : > { %1451 = vmatprep.subr.bf16.mxu0 %v1981_v0  ;;  %1511 = vmatprep.subr.bf16.mxu1 %v1981_v0 }
  0x70   : > { %1452 = vmatpush3.bf16.msra.mxu0 %v2223_v19  ;;  %1512 = vmatpush3.bf16.msra.mxu1 %v2226_v20 }
  0x71   : > { %1453 = vmatprep.subr.bf16.mxu0 %v1981_v0  ;;  %1513 = vmatprep.subr.bf16.mxu1 %v1981_v0 }
  0x74   : > { %1454 = vmatpush3.bf16.msra.mxu0 %v2228_v21  ;;  %1514 = vmatpush3.bf16.msra.mxu1 %v2233_v22 }
  0x75   : > { %1455 = vmatprep.subr.bf16.mxu0 %v1981_v0  ;;  %1515 = vmatprep.subr.bf16.mxu1 %v1981_v0 }
  0x78   : > { %1456 = vmatpush3.bf16.msra.mxu0 %v2236_v23  ;;  %1516 = vmatpush3.bf16.msra.mxu1 %v2241_v24 }
  0x79   : > { %1457 = vmatprep.subr.bf16.mxu0 %v1981_v0  ;;  %1517 = vmatprep.subr.bf16.mxu1 %v1981_v0 }
  0x7c   : > { %1458 = vmatpush3.bf16.msra.mxu0 %v2247_v25  ;;  %1518 = vmatpush3.bf16.msra.mxu1 %v2251_v26 }
  0x7d   : > { %1463 = vmatprep.subr.bf16.mxu0 %v1981_v0  ;;  %1523 = vmatprep.subr.bf16.mxu1 %v1981_v0 }
  0xd0   : > { %v237_v27 = vpop.permute.xlu0 %236  ;;  %v461_v29 = vpop.permute.xlu1 %460 }
  0xd1   : > { %243 = vst.msk [vmem:[#allocation2] sm:$0xff] %vm242_vm2, %v237_v27  ;;  %v2441_v27 = vld [vmem:[#allocation4 + $0x30] sm:$0xff]  }
  0xd4   : > { %v239_v28 = vpop.permute.xlu0 %238  ;;  %v463_v33 = vpop.permute.xlu1 %462 }
  0xd5   : > { %244 = vst.msk [vmem:[#allocation2 + $0x8] sm:$0xff] %vm242_vm2, %v239_v28  ;;  %v2445_v28 = vld [vmem:[#allocation4 + $0x20] sm:$0xff]  }
  0xd8   : > { %v245_v31 = vld [vmem:[#allocation2] sm:$0xff]  ;;  %v693_v39 = vpop.permute.xlu0 %692  ;;  %v695_v45 = vpop.permute.xlu1 %694 }
  0xd9   : > { %453 = vst.msk [vmem:[#allocation2] sm:$0xff] %vm228_vm1, %v1288_v30 }
  0xda   : > { %466 = vst.msk [vmem:[#allocation2] sm:$0xff] %vm242_vm2, %v461_v29 }
  0xdc   : > { %v246_v34 = vld [vmem:[#allocation2 + $0x8] sm:$0xff]  ;;  %v915_v51 = vpop.permute.xlu0 %914  ;;  %v917_v57 = vpop.permute.xlu1 %916 }
  0xdd   : > { %454 = vst.msk [vmem:[#allocation2 + $0x8] sm:$0xff] %vm228_vm1, %v1289_v32  ;;  %v2265_v35 = vpack.c.bf16 %v246_v34, %v245_v31  ;;  %v2453_v32 = vld [vmem:[#allocation4 + $0x28] sm:$0xff]  }
  0xde   : > { %467 = vst.msk [vmem:[#allocation2 + $0x8] sm:$0xff] %vm242_vm2, %v463_v33 }
  0xdf   : > { %v248_v36 = vunpack.c.l.bf16 %v2265_v35  ;;  %v249_v37 = vunpack.c.h.bf16 %v2265_v35 }
  0xe1   : > { %v2271_v40 = vsub.f32 %v245_v31, %v248_v36  ;;  %v2273_v41 = vsub.f32 %v246_v34, %v249_v37  ;;  %v468_v42 = vld [vmem:[#allocation2] sm:$0xff]  ;;  %v2449_v31 = vld [vmem:[#allocation4 + $0x38] sm:$0xff]  }
  0xe2   : > { %685 = vst.msk [vmem:[#allocation2] sm:$0xff] %vm228_vm1, %v1300_v38  ;;  %v2459_v34 = vld [vmem:[#allocation4 + $0x30] sm:$0xff]   ;;  %v2468_v37 = vld [vmem:[#allocation4 + $0x38] sm:$0xff]  }
  0xe3   : > { %v2278_v43 = vpack.c.bf16 %v2273_v41, %v2271_v40  ;;  %698 = vst.msk [vmem:[#allocation2] sm:$0xff] %vm242_vm2, %v693_v39 }
  0xe5   : > { %1460 = vmatmul.mubr.bf16.vlgmr.msra.gmra.mrb[0].mxu0 %v2278_v43  ;;  %v469_v46 = vld [vmem:[#allocation2 + $0x8] sm:$0xff] }
  0xe6   : > { %1464 = vmatpush3.bf16.msra.mxu0 %v2180_v5  ;;  %v2284_v47 = vpack.c.bf16 %v469_v46, %v468_v42  ;;  %1479 = vmatprep.mubr.msk.bf16.mxu0 %vm1983_vm0, %v1981_v0  ;;  %686 = vst.msk [vmem:[#allocation2 + $0x8] sm:$0xff] %vm228_vm1, %v1301_v44 }
  0xe7   : > { %1465 = vmatprep.subr.bf16.mxu0 %v1981_v0  ;;  %699 = vst.msk [vmem:[#allocation2 + $0x8] sm:$0xff] %vm242_vm2, %v695_v45 }
  0xe8   : > { %v471_v48 = vunpack.c.l.bf16 %v2284_v47  ;;  %v472_v49 = vunpack.c.h.bf16 %v2284_v47 }
  0xea   : > { %1466 = vmatpush3.bf16.msra.mxu0 %v2186_v8  ;;  %v2295_v52 = vsub.f32 %v468_v42, %v471_v48  ;;  %v2297_v53 = vsub.f32 %v469_v46, %v472_v49  ;;  %v700_v54 = vld [vmem:[#allocation2] sm:$0xff] }
  0xeb   : > { %1467 = vmatprep.subr.bf16.mxu0 %v1981_v0  ;;  %907 = vst.msk [vmem:[#allocation2] sm:$0xff] %vm228_vm1, %v1312_v50 }
  0xec   : > { %v2303_v55 = vpack.c.bf16 %v2297_v53, %v2295_v52  ;;  %920 = vst.msk [vmem:[#allocation2] sm:$0xff] %vm242_vm2, %v915_v51 }
  0xee   : > { %1468 = vmatpush3.bf16.msra.mxu0 %v2203_v15  ;;  %1520 = vmatmul.mubr.bf16.vlgmr.msra.gmra.mrb[0].mxu1 %v2303_v55  ;;  %v701_v58 = vld [vmem:[#allocation2 + $0x8] sm:$0xff]  ;;  %v477_v14 = vunpack.c.h.bf16 %v2303_v55 }
  0xef   : > { %1524 = vmatpush3.bf16.msra.mxu1 %v2189_v9  ;;  %1469 = vmatprep.subr.bf16.mxu0 %v1981_v0  ;;  %908 = vst.msk [vmem:[#allocation2 + $0x8] sm:$0xff] %vm228_vm1, %v1313_v56  ;;  %v2312_v59 = vpack.c.bf16 %v701_v58, %v700_v54 }
  0xf0   : > { %1525 = vmatprep.subr.bf16.mxu1 %v1981_v0  ;;  %1539 = vmatprep.mubr.msk.bf16.mxu1 %vm1983_vm0, %v1981_v0  ;;  %921 = vst.msk [vmem:[#allocation2 + $0x8] sm:$0xff] %vm242_vm2, %v917_v57 }
  0xf1   : > { %v703_v60 = vunpack.c.l.bf16 %v2312_v59  ;;  %v704_v61 = vunpack.c.h.bf16 %v2312_v59 }
  0xf2   : > { %1470 = vmatpush3.bf16.msra.mxu0 %v2214_v17 }
  0xf3   : > { %1526 = vmatpush3.bf16.msra.mxu1 %v2197_v13  ;;  %1471 = vmatprep.subr.bf16.mxu0 %v1981_v0  ;;  %v705_v62 = vsub.f32 %v700_v54, %v703_v60  ;;  %v706_v63 = vsub.f32 %v701_v58, %v704_v61  ;;  %v922_v29 = vld [vmem:[#allocation2] sm:$0xff] }
  0xf4   : > { %1527 = vmatprep.subr.bf16.mxu1 %v1981_v0 }
  0xf5   : > { %v2324_v1 = vpack.c.bf16 %v706_v63, %v705_v62 }
  0xf6   : > { %1472 = vmatpush3.bf16.msra.mxu0 %v2223_v19 }
  0xf7   : > { %1528 = vmatpush3.bf16.msra.mxu1 %v2209_v16  ;;  %1473 = vmatprep.subr.bf16.mxu0 %v1981_v0  ;;  %v708_v2 = vunpack.c.l.bf16 %v2324_v1  ;;  %v709_v3 = vunpack.c.h.bf16 %v2324_v1  ;;  %v923_v30 = vld [vmem:[#allocation2 + $0x8] sm:$0xff] }
  0xf8   : > { %1529 = vmatprep.subr.bf16.mxu1 %v1981_v0  ;;  %v924_v33 = vpack.c.bf16 %v923_v30, %v922_v29 }
  0xf9   : > { %v2332_v4 = vsub.f32 %v705_v62, %v708_v2  ;;  %v2334_v6 = vsub.f32 %v706_v63, %v709_v3 }
  0xfa   : > { %1474 = vmatpush3.bf16.msra.mxu0 %v2228_v21  ;;  %v926_v36 = vunpack.c.h.bf16 %v924_v33 }
  0xfb   : > { %1530 = vmatpush3.bf16.msra.mxu1 %v2219_v18  ;;  %1475 = vmatprep.subr.bf16.mxu0 %v1981_v0  ;;  %v712_v7 = vpack.c.bf16 %v2334_v6, %v2332_v4 }
  0xfc   : > { %1531 = vmatprep.subr.bf16.mxu1 %v1981_v0  ;;  %v2473_v39 = vsub.f32 %v923_v30, %v926_v36 }
  0xfe   : > { %1476 = vmatpush3.bf16.msra.mxu0 %v2236_v23 }
  0xff   : > { %1532 = vmatpush3.bf16.msra.mxu1 %v2226_v20  ;;  %1477 = vmatprep.subr.bf16.mxu0 %v1981_v0 }
 0x100   : > { %1533 = vmatprep.subr.bf16.mxu1 %v1981_v0 }
 0x102   : > { %1478 = vmatpush3.bf16.msra.mxu0 %v2247_v25 }
 0x103   : > { %1534 = vmatpush3.bf16.msra.mxu1 %v2233_v22  ;;  %1483 = vmatprep.subr.bf16.mxu0 %v1981_v0 }
 0x104   : > { %1535 = vmatprep.subr.bf16.mxu1 %v1981_v0 }
 0x105   : > { %1480 = vmatmul.mubr.bf16.vlgmr.msra.gmra.mrb[0].mxu0 %v2265_v35  ;;  %v925_v35 = vunpack.c.l.bf16 %v924_v33 }
 0x106   : > { %1484 = vmatpush3.bf16.msra.mxu0 %v2180_v5  ;;  %1499 = vmatprep.mubr.msk.bf16.mxu0 %vm1983_vm0, %v1981_v0  ;;  %v253_v5 = vunpack.c.l.bf16 %v2278_v43 }
 0x107   : > { %1536 = vmatpush3.bf16.msra.mxu1 %v2241_v24  ;;  %1485 = vmatprep.subr.bf16.mxu0 %v1981_v0  ;;  %v2471_v38 = vsub.f32 %v922_v29, %v925_v35 }
 0x108   : > { %1537 = vmatprep.subr.bf16.mxu1 %v1981_v0 }
 0x10a   : > { %1486 = vmatpush3.bf16.msra.mxu0 %v2186_v8  ;;  %v254_v8 = vunpack.c.h.bf16 %v2278_v43 }
 0x10b   : > { %1538 = vmatpush3.bf16.msra.mxu1 %v2251_v26  ;;  %1487 = vmatprep.subr.bf16.mxu0 %v1981_v0 }
 0x10c   : > { %1543 = vmatprep.subr.bf16.mxu1 %v1981_v0  ;;  %v256_v10 = vsub.f32 %v2273_v41, %v254_v8 }
 0x10e   : > { %1488 = vmatpush3.bf16.msra.mxu0 %v2203_v15  ;;  %1540 = vmatmul.mubr.bf16.vlgmr.msra.gmra.mrb[0].mxu1 %v2284_v47  ;;  %v2397_v15 = vld [vmem:[#allocation4 + $0x8] sm:$0xff]  }
 0x10f   : > { %1544 = vmatpush3.bf16.msra.mxu1 %v2189_v9  ;;  %1489 = vmatprep.subr.bf16.mxu0 %v1981_v0  ;;  %v255_v9 = vsub.f32 %v2271_v40, %v253_v5  ;;  %v2480_v40 = vpack.c.bf16 %v2473_v39, %v2471_v38 }
 0x110   : > { %1545 = vmatprep.subr.bf16.mxu1 %v1981_v0  ;;  %1559 = vmatprep.mubr.msk.bf16.mxu1 %vm1983_vm0, %v1981_v0 }
 0x111   : > { %v257_v12 = vpack.c.bf16 %v256_v10, %v255_v9  ;;  %v930_v41 = vunpack.c.l.bf16 %v2480_v40  ;;  %v931_v42 = vunpack.c.h.bf16 %v2480_v40 }
 0x112   : > { %1490 = vmatpush3.bf16.msra.mxu0 %v2214_v17  ;;  %v479_v17 = vsub.f32 %v2297_v53, %v477_v14 }
 0x113   : > { %1546 = vmatpush3.bf16.msra.mxu1 %v2197_v13  ;;  %1491 = vmatprep.subr.bf16.mxu0 %v1981_v0  ;;  %v476_v13 = vunpack.c.l.bf16 %v2303_v55  ;;  %v932_v43 = vsub.f32 %v2471_v38, %v930_v41  ;;  %v933_v44 = vsub.f32 %v2473_v39, %v931_v42 }
 0x114   : > { %1547 = vmatprep.subr.bf16.mxu1 %v1981_v0 }
 0x115   : > { %v934_v45 = vpack.c.bf16 %v933_v44, %v932_v43 }
 0x116   : > { %1492 = vmatpush3.bf16.msra.mxu0 %v2223_v19  ;;  %v2411_v19 = vld [vmem:[#allocation4] sm:$0xff]  }
 0x117   : > { %1548 = vmatpush3.bf16.msra.mxu1 %v2209_v16  ;;  %1493 = vmatprep.subr.bf16.mxu0 %v1981_v0  ;;  %v478_v16 = vsub.f32 %v2295_v52, %v476_v13 }
 0x118   : > { %1549 = vmatprep.subr.bf16.mxu1 %v1981_v0 }
 0x11a   : > { %1494 = vmatpush3.bf16.msra.mxu0 %v2228_v21  ;;  %v2415_v21 = vld [vmem:[#allocation4 + $0x18] sm:$0xff]  }
 0x11b   : > { %1550 = vmatpush3.bf16.msra.mxu1 %v2219_v18  ;;  %1495 = vmatprep.subr.bf16.mxu0 %v1981_v0  ;;  %v2407_v18 = vld [vmem:[#allocation4 + $0x10] sm:$0xff]  }
 0x11c   : > { %1551 = vmatprep.subr.bf16.mxu1 %v1981_v0 }
 0x11e   : > { %1496 = vmatpush3.bf16.msra.mxu0 %v2236_v23  ;;  %v2425_v23 = vld [vmem:[#allocation4 + $0x20] sm:$0xff]  }
 0x11f   : > { %1552 = vmatpush3.bf16.msra.mxu1 %v2226_v20  ;;  %1497 = vmatprep.subr.bf16.mxu0 %v1981_v0  ;;  %v480_v20 = vpack.c.bf16 %v479_v17, %v478_v16 }
 0x120   : > { %1553 = vmatprep.subr.bf16.mxu1 %v1981_v0 }
 0x122   : > { %1498 = vmatpush3.bf16.msra.mxu0 %v2247_v25  ;;  %v2433_v25 = vld [vmem:[#allocation4 + $0x28] sm:$0xff]  }
 0x123   : > { %1554 = vmatpush3.bf16.msra.mxu1 %v2233_v22  ;;  %1563 = vmatprep.subr.bf16.mxu0 %v1981_v0  ;;  %v2419_v22 = vld [vmem:[#allocation4 + $0x8] sm:$0xff]  }
 0x124   : > { %1555 = vmatprep.subr.bf16.mxu1 %v1981_v0 }
 0x125   : > { %1500 = vmatmul.mubr.bf16.vlgmr.msra.gmra.mrb[0].mxu0 %v257_v12 }
 0x126   : > { %1564 = vmatpush3.bf16.msra.mxu0 %v2389_v11  ;;  %1579 = vmatprep.mubr.msk.bf16.mxu0 %vm1983_vm0, %v1981_v0 }
 0x127   : > { %1556 = vmatpush3.bf16.msra.mxu1 %v2241_v24  ;;  %1565 = vmatprep.subr.bf16.mxu0 %v1981_v0  ;;  %v2429_v24 = vld [vmem:[#allocation4 + $0x10] sm:$0xff]  }
 0x128   : > { %1557 = vmatprep.subr.bf16.mxu1 %v1981_v0 }
 0x12a   : > { %1566 = vmatpush3.bf16.msra.mxu0 %v2397_v15 }
 0x12b   : > { %1558 = vmatpush3.bf16.msra.mxu1 %v2251_v26  ;;  %1567 = vmatprep.subr.bf16.mxu0 %v1981_v0  ;;  %v2437_v26 = vld [vmem:[#allocation4 + $0x18] sm:$0xff]  }
 0x12c   : > { %1623 = vmatprep.subr.bf16.mxu1 %v1981_v0 }
 0x12e   : > { %1560 = vmatmul.mubr.bf16.vlgmr.msra.gmra.mrb[0].mxu1 %v480_v20  ;;  %1568 = vmatpush3.bf16.msra.mxu0 %v2407_v18 }
 0x12f   : > { %1624 = vmatpush3.bf16.msra.mxu1 %v2411_v19  ;;  %1569 = vmatprep.subr.bf16.mxu0 %v1981_v0 }
 0x130   : > { %1625 = vmatprep.subr.bf16.mxu1 %v1981_v0  ;;  %1639 = vmatprep.mubr.msk.bf16.mxu1 %vm1983_vm0, %v1981_v0 }
 0x132   : > { %1570 = vmatpush3.bf16.msra.mxu0 %v2415_v21 }
 0x133   : > { %1626 = vmatpush3.bf16.msra.mxu1 %v2419_v22  ;;  %1571 = vmatprep.subr.bf16.mxu0 %v1981_v0 }
 0x134   : > { %1627 = vmatprep.subr.bf16.mxu1 %v1981_v0 }
 0x136   : > { %1572 = vmatpush3.bf16.msra.mxu0 %v2425_v23 }
 0x137   : > { %1628 = vmatpush3.bf16.msra.mxu1 %v2429_v24  ;;  %1573 = vmatprep.subr.bf16.mxu0 %v1981_v0 }
 0x138   : > { %1629 = vmatprep.subr.bf16.mxu1 %v1981_v0 }
 0x13a   : > { %1574 = vmatpush3.bf16.msra.mxu0 %v2433_v25 }
 0x13b   : > { %1630 = vmatpush3.bf16.msra.mxu1 %v2437_v26  ;;  %1575 = vmatprep.subr.bf16.mxu0 %v1981_v0 }
 0x13c   : > { %1631 = vmatprep.subr.bf16.mxu1 %v1981_v0 }
 0x13e   : > { %1576 = vmatpush3.bf16.msra.mxu0 %v2441_v27 }
 0x13f   : > { %1632 = vmatpush3.bf16.msra.mxu1 %v2445_v28  ;;  %1577 = vmatprep.subr.bf16.mxu0 %v1981_v0 }
 0x140   : > { %1633 = vmatprep.subr.bf16.mxu1 %v1981_v0 }
 0x142   : > { %1578 = vmatpush3.bf16.msra.mxu0 %v2449_v31 }
 0x143   : > { %1634 = vmatpush3.bf16.msra.mxu1 %v2453_v32  ;;  %1583 = vmatprep.subr.bf16.mxu0 %v1981_v0 }
 0x144   : > { %1635 = vmatprep.subr.bf16.mxu1 %v1981_v0 }
 0x145   : > { %1580 = vmatmul.mubr.bf16.vlgmr.msra.gmra.mrb[4].mxu0 %v2324_v1 }
 0x146   : > { %1584 = vmatpush3.bf16.msra.mxu0 %v2389_v11  ;;  %1599 = vmatprep.mubr.msk.bf16.mxu0 %vm1983_vm0, %v1981_v0 }
 0x147   : > { %1636 = vmatpush3.bf16.msra.mxu1 %v2459_v34  ;;  %1585 = vmatprep.subr.bf16.mxu0 %v1981_v0 }
 0x148   : > { %1637 = vmatprep.subr.bf16.mxu1 %v1981_v0 }
 0x14a   : > { %1586 = vmatpush3.bf16.msra.mxu0 %v2397_v15 }
 0x14b   : > { %1638 = vmatpush3.bf16.msra.mxu1 %v2468_v37  ;;  %1587 = vmatprep.subr.bf16.mxu0 %v1981_v0 }
 0x14c   : > { %1643 = vmatprep.subr.bf16.mxu1 %v1981_v0 }
 0x14e   : > { %1588 = vmatpush3.bf16.msra.mxu0 %v2407_v18  ;;  %1640 = vmatmul.mubr.bf16.vlgmr.msra.gmra.mrb[4].mxu1 %v2480_v40 }
 0x14f   : > { %1644 = vmatpush3.bf16.msra.mxu1 %v2411_v19  ;;  %1589 = vmatprep.subr.bf16.mxu0 %v1981_v0 }
 0x150   : > { %1645 = vmatprep.subr.bf16.mxu1 %v1981_v0  ;;  %1659 = vmatprep.mubr.msk.bf16.mxu1 %vm1983_vm0, %v1981_v0 }
 0x152   : > { %1590 = vmatpush3.bf16.msra.mxu0 %v2415_v21 }
 0x153   : > { %1646 = vmatpush3.bf16.msra.mxu1 %v2419_v22  ;;  %1591 = vmatprep.subr.bf16.mxu0 %v1981_v0 }
 0x154   : > { %1647 = vmatprep.subr.bf16.mxu1 %v1981_v0 }
 0x156   : > { %1592 = vmatpush3.bf16.msra.mxu0 %v2425_v23 }
 0x157   : > { %1648 = vmatpush3.bf16.msra.mxu1 %v2429_v24  ;;  %1593 = vmatprep.subr.bf16.mxu0 %v1981_v0 }
 0x158   : > { %1649 = vmatprep.subr.bf16.mxu1 %v1981_v0 }
 0x15a   : > { %1594 = vmatpush3.bf16.msra.mxu0 %v2433_v25 }
 0x15b   : > { %1650 = vmatpush3.bf16.msra.mxu1 %v2437_v26  ;;  %1595 = vmatprep.subr.bf16.mxu0 %v1981_v0 }
 0x15c   : > { %1651 = vmatprep.subr.bf16.mxu1 %v1981_v0 }
 0x15e   : > { %1596 = vmatpush3.bf16.msra.mxu0 %v2441_v27 }
 0x15f   : > { %1652 = vmatpush3.bf16.msra.mxu1 %v2445_v28  ;;  %1597 = vmatprep.subr.bf16.mxu0 %v1981_v0 }
 0x160   : > { %1653 = vmatprep.subr.bf16.mxu1 %v1981_v0 }
 0x162   : > { %1598 = vmatpush3.bf16.msra.mxu0 %v2449_v31 }
 0x163   : > { %1654 = vmatpush3.bf16.msra.mxu1 %v2453_v32  ;;  %1603 = vmatprep.subr.bf16.mxu0 %v1981_v0 }
 0x164   : > { %1655 = vmatprep.subr.bf16.mxu1 %v1981_v0 }
 0x165   : > { %1600 = vmatmul.mubr.bf16.vlgmr.msra.gmra.mrb[4].mxu0 %v2312_v59 }
 0x166   : > { %1604 = vmatpush3.bf16.msra.mxu0 %v2389_v11  ;;  %1619 = vmatprep.mubr.msk.bf16.mxu0 %vm1983_vm0, %v1981_v0 }
 0x167   : > { %1656 = vmatpush3.bf16.msra.mxu1 %v2459_v34  ;;  %1605 = vmatprep.subr.bf16.mxu0 %v1981_v0 }
 0x168   : > { %1657 = vmatprep.subr.bf16.mxu1 %v1981_v0 }
 0x16a   : > { %1606 = vmatpush3.bf16.msra.mxu0 %v2397_v15 }
 0x16b   : > { %1658 = vmatpush3.bf16.msra.mxu1 %v2468_v37  ;;  %1607 = vmatprep.subr.bf16.mxu0 %v1981_v0 }
 0x16c   : > { %1663 = vmatprep.subr.bf16.mxu1 %v1981_v0 }
 0x16e   : > { %1608 = vmatpush3.bf16.msra.mxu0 %v2407_v18  ;;  %1660 = vmatmul.mubr.bf16.vlgmr.msra.gmra.mrb[4].mxu1 %v924_v33 }
 0x16f   : > { %1664 = vmatpush3.bf16.msra.mxu1 %v2411_v19  ;;  %1609 = vmatprep.subr.bf16.mxu0 %v1981_v0 }
 0x170   : > { %1665 = vmatprep.subr.bf16.mxu1 %v1981_v0  ;;  %1679 = vmatprep.mubr.msk.bf16.mxu1 %vm1983_vm0, %v1981_v0 }
 0x172   : > { %1610 = vmatpush3.bf16.msra.mxu0 %v2415_v21 }
 0x173   : > { %1666 = vmatpush3.bf16.msra.mxu1 %v2419_v22  ;;  %1611 = vmatprep.subr.bf16.mxu0 %v1981_v0 }
 0x174   : > { %1667 = vmatprep.subr.bf16.mxu1 %v1981_v0 }
 0x176   : > { %1612 = vmatpush3.bf16.msra.mxu0 %v2425_v23 }
 0x177   : > { %1668 = vmatpush3.bf16.msra.mxu1 %v2429_v24  ;;  %1613 = vmatprep.subr.bf16.mxu0 %v1981_v0 }
 0x178   : > { %1669 = vmatprep.subr.bf16.mxu1 %v1981_v0 }
 0x17a   : > { %1614 = vmatpush3.bf16.msra.mxu0 %v2433_v25 }
 0x17b   : > { %1670 = vmatpush3.bf16.msra.mxu1 %v2437_v26  ;;  %1615 = vmatprep.subr.bf16.mxu0 %v1981_v0 }
 0x17c   : > { %1671 = vmatprep.subr.bf16.mxu1 %v1981_v0 }
 0x17e   : > { %1616 = vmatpush3.bf16.msra.mxu0 %v2441_v27 }
 0x17f   : > { %1672 = vmatpush3.bf16.msra.mxu1 %v2445_v28  ;;  %1617 = vmatprep.subr.bf16.mxu0 %v1981_v0 }
 0x180   : > { %1673 = vmatprep.subr.bf16.mxu1 %v1981_v0 }
 0x182   : > { %1618 = vmatpush3.bf16.msra.mxu0 %v2449_v31 }
 0x183   : > { %1674 = vmatpush3.bf16.msra.mxu1 %v2453_v32 }
 0x184   : > { %1675 = vmatprep.subr.bf16.mxu1 %v1981_v0 }
 0x185   : > { %1620 = vmatmul.mubr.bf16.vlgmr.msra.gmra.mrb[4].mxu0 %v712_v7 }
 0x187   : > { %1676 = vmatpush3.bf16.msra.mxu1 %v2459_v34 }
 0x188   : > { %1677 = vmatprep.subr.bf16.mxu1 %v1981_v0 }
 0x18b   : > { %1678 = vmatpush3.bf16.msra.mxu1 %v2468_v37 }
 0x18e   : > { %1680 = vmatmul.mubr.bf16.vlgmr.msra.gmra.mrb[4].mxu1 %v934_v45 }
 0x1f8   : > { %v438_v46 = vpop.f32.mrb[0].mxu0 }
 0x1f9   : > { %447 = vst [vmem:[#allocation3] ss:$2 sm:$0xff] %v438_v46  ;;  %v1501_v47 = vpop.f32.mrb[1].mxu0 }
 0x1fa   : > { %v441_v48 = vpop.f32.mrb[2].mxu0 }
 0x1fb   : > { %449 = vst [vmem:[#allocation3 + $0x10] ss:$2 sm:$0xff] %v441_v48  ;;  %v1502_v49 = vpop.f32.mrb[3].mxu0 }
 0x201   : > { %v661_v50 = vpop.f32.mrb[0].mxu1 }
 0x202   : > { %671 = vst [vmem:[#allocation3 + $0x1] ss:$2 sm:$0xff] %v661_v50  ;;  %v1561_v51 = vpop.f32.mrb[1].mxu1 }
 0x203   : > { %v664_v52 = vpop.f32.mrb[2].mxu1 }
 0x204   : > { %673 = vst [vmem:[#allocation3 + $0x11] ss:$2 sm:$0xff] %v664_v52  ;;  %v1562_v0 = vpop.f32.mrb[3].mxu1 }
 0x209   : > { %v674_v53 = vld [vmem:[#allocation3] sm:$0xff]  ;;  %v675_v54 = vld [vmem:[#allocation3 + $0x8] sm:$0xff] }
 0x20a   : > { %678 = vst [vmem:[%s220_s21] sm:$0xff] %v674_v53  ;;  %679 = vst [vmem:[%s220_s21 + $0x8] sm:$0xff] %v675_v54 }
 0x20b   : > { %v676_v55 = vld [vmem:[#allocation3 + $0x10] sm:$0xff]  ;;  %v677_v56 = vld [vmem:[#allocation3 + $0x18] sm:$0xff] }
 0x20c   : > { %680 = vst [vmem:[%s220_s21 + $0x10] sm:$0xff] %v676_v55  ;;  %681 = vst [vmem:[%s220_s21 + $0x18] sm:$0xff] %v677_v56 }
 0x258   : > { %v893_v57 = vpop.f32.mrb[4].mxu0 }
 0x259   : > { %902 = vst [vmem:[#allocation3] ss:$2 sm:$0xff] %v893_v57  ;;  %v1621_v58 = vpop.f32.mrb[5].mxu0 }
 0x25a   : > { %v896_v59 = vpop.f32.mrb[6].mxu0 }
 0x25b   : > { %903 = vst [vmem:[#allocation3 + $0x10] ss:$2 sm:$0xff] %v896_v59  ;;  %v1622_v60 = vpop.f32.mrb[7].mxu0 }
 0x261   : > { %v1115_v61 = vpop.f32.mrb[4].mxu1 }
 0x262   : > { %1124 = vst [vmem:[#allocation3 + $0x1] ss:$2 sm:$0xff] %v1115_v61  ;;  %v1681_v62 = vpop.f32.mrb[5].mxu1 }
 0x263   : > { %v1118_v63 = vpop.f32.mrb[6].mxu1 }
 0x264   : > { %1125 = vst [vmem:[#allocation3 + $0x11] ss:$2 sm:$0xff] %v1118_v63  ;;  %v1682_v1 = vpop.f32.mrb[7].mxu1 }
 0x269   : > { %v1126_v2 = vld [vmem:[#allocation3] sm:$0xff]  ;;  %v1127_v3 = vld [vmem:[#allocation3 + $0x8] sm:$0xff] }
 0x26a   : > { %1324 = vst [vmem:[%s220_s21 + $0x20] sm:$0xff] %v1126_v2  ;;  %1325 = vst [vmem:[%s220_s21 + $0x28] sm:$0xff] %v1127_v3 }
 0x26b   : > { %v1128_v4 = vld [vmem:[#allocation3 + $0x10] sm:$0xff]  ;;  %v1129_v6 = vld [vmem:[#allocation3 + $0x18] sm:$0xff] }
 0x26c   : > { %1326 = vst [vmem:[%s220_s21 + $0x30] sm:$0xff] %v1128_v4  ;;  %1327 = vst [vmem:[%s220_s21 + $0x38] sm:$0xff] %v1129_v6 }
 0x26d   : > { %1900 = shalt.err (!%p1897_p5)
}
 0x26e   : > { %s1901_s18 = scalar_lea.hbm %s2561_s27, 1024  ;;  %s1905_s22 = scalar_lea.hbm %s2614_s2, 2048 }
 0x26f   : > { %p1902_p9 = scmp.ne.s32.totalorder %s2561_s27, %s1901_s18  ;;  %p1906_p3 = scmp.lt.u32.totalorder %s2561_s27, %s2614_s2 }
 0x270   : > { %p1907_p7 = scmp.lt.u32.totalorder %s1905_s22, %s1901_s18  ;;  %p1909_p4 = scmp.lt.u32.totalorder %s1901_s18, %s2561_s27 }
 0x271   : > { %p1903_p1 = pnand %p1902_p9, %p2098_p10 }
 0x272   : > { %p1908_p13 = por %p1907_p7, %p1906_p3 }
 0x273   : > { %p1904_p2 = pneg %p1903_p1 }
 0x274   : > { %p1910_p6 = por %p1909_p4, %p1908_p13 }
 0x276   : > { %p1911_p8 = pnand %p1910_p6, %p1904_p2 }
 0x278   : > { %1914 = shalt.err (!%p1911_p8)
}
 0x279   : > { %s1985_s19 = smov 128   ;;  %s1986_s21 = smov 8  }
 0x27a   : > { %1721 = dma.vmem_to_hbm [thread:$0]  (%p2098_p10), %s2563_s5, 1024, %s2561_s27, %s1136_s12, %s1985_s19, %s1985_s19, %s1986_s21  }
 0x27b PF: > { %s1170_s4 = sand.u32 1, %s1953_s9   ;;  %p2632_p12 = scmp.ne.s32.totalorder %s2622_s20, 0 }
 0x27c   : > { %p2633_p11 = scmp.ge.s32.totalorder %s1973_s14, 2  ;;  %s1171_s6 = scalar_lea.sflag [#allocation6], %s1170_s4 }
 0x27e   : > { %p1732_p0 = pnand %p2633_p11, %p2632_p12 }
 0x280   : > { %1948 = dma.done.wait (!%p1732_p0), %s1171_s6, 1024  }
 0x281   : > { %1950 = vsyncadd (!%p1732_p0), %s1171_s6, 4294966272  ;;  %s19_s14 = sadd.s32 1, %s1973_s14   ;;  %s2634_s9 = smov %s1957_s10 }
 0x282   : > { %p16_p5 = scmp.ge.s32.totalorder %s19_s14, 4   ;;  %s2635_s10 = smov %s1961_s11 }
 0x283   : > { %s2636_s11 = smov %s2107_s28  ;;  %s2637_s12 = smov %s1969_s13 }
 0x284   : > { %s2638_s13 = smov %s2640_s25  ;;  %18 = sbr.rel (!%p16_p5) target bundleno = 7 (0x7), region = 89 }
 0x28b   :  { %1176 = vsyncpa [#allocation5], 1 }
 0x28c   :  { %1178 = vsyncpa [#allocation5 + $0x1], 1 }
 0x28d   :  { %1179 = vsyncpa [#allocation8], 1 }
 0x28e   :  { %1181 = vsyncpa [#allocation8 + $0x1], 1 }
 0x28f   :  { %1182 = vsyncpa [#allocation6], 1 }
 0x290   :  { %1184 = vsyncpa [#allocation6 + $0x1], 1 }

</bundles_post_ra>
